<compile_context>
chip_gen: v7x
topology: tpu7x:2x2x1
jax: 0.10.0
libtpu: 0.0.40
codegen_flags: <defaults>
</compile_context>

<pallas_src>
import functools

import jax
import jax.numpy as jnp
from jax.experimental import pallas as pl
from jax.experimental.pallas import tpu as pltpu

BN_EPS = 1e-5


# -------------------- Fused encoder + classifier kernel --------------------
def fused_kernel(pf_ref, xyz_ref, wf_ref, wx_ref, enc_vec_ref,
                 w1_ref, w2_ref, w3_ref, head_vec_ref,
                 probs_ref, feats_ref, acc_ref, *, inv_n):
    """Grid axis 0 tiles the point dimension N (reduction axis, 'arbitrary').

    enc_vec rows : [backbone bias, folded-BN scale, folded-BN shift]        (3, E)
    head_vec rows: [b1_folded, b2_folded (padded), b3 (pad classes=-1e30)]  (3, >=512)
    """
    n = pl.program_id(0)

    @pl.when(n == 0)
    def _init():
        acc_ref[...] = jnp.zeros_like(acc_ref)

    # ---- encoder tile: point-wise MLP (bf16 MXU, f32 accumulation) ----
    B, tn, cin = pf_ref.shape
    x = pf_ref[...].reshape(B * tn, cin)            # (B*tN, in_dim) bf16
    xz = xyz_ref[...].reshape(B * tn, 3)            # (B*tN, 3)      bf16
    f = jnp.dot(x, wf_ref[...], preferred_element_type=jnp.float32)
    f = f + jnp.dot(xz, wx_ref[...], preferred_element_type=jnp.float32)
    f = jnp.maximum(f + enc_vec_ref[0:1, :], 0.0)   # per-point bias + ReLU (can't hoist)
    acc_ref[...] += f.reshape(B, tn, -1).sum(axis=1)  # partial sum over points

    # ---- finalize: mean-pool, folded encoder BN, ReLU, classifier head, softmax ----
    @pl.when(n == pl.num_programs(0) - 1)
    def _finish():
        pooled = acc_ref[...] * inv_n                                 # mean over true N
        pooled = pooled * enc_vec_ref[1:2, :] + enc_vec_ref[2:3, :]   # eval BN (folded)
        pooled = jnp.maximum(pooled, 0.0)
        feats_ref[...] = pooled

        h1 = w1_ref.shape[1]
        h2 = w2_ref.shape[1]
        n_pad = w3_ref.shape[1]
        # Dropout layers are identity at inference.
        h = jnp.dot(pooled, w1_ref[...], preferred_element_type=jnp.float32)
        h = jnp.maximum(h + head_vec_ref[0:1, 0:h1], 0.0)
        h = jnp.dot(h, w2_ref[...], preferred_element_type=jnp.float32)
        h = jnp.maximum(h + head_vec_ref[1:2, 0:h2], 0.0)
        logits = jnp.dot(h, w3_ref[...], preferred_element_type=jnp.float32)
        logits = logits + head_vec_ref[2:3, 0:n_pad]   # pad-class lanes carry -1e30

        mx = jnp.max(logits, axis=1, keepdims=True)
        e = jnp.exp(logits - mx)
        probs_ref[...] = e / jnp.sum(e, axis=1, keepdims=True)


def _choose_tile_n(N, B, E):
    """Pick a point-tile that keeps the per-tile (B*tN, E) f32 intermediate a few
    MiB, so double-buffered bf16 inputs + intermediate stay well under the scoped
    VMEM floor (v5e default 16 MiB; v7x has only 64 MiB physical)."""
    cap = max(128, (4 << 20) // max(1, B * E * 4))
    for tn in (2048, 1024, 512, 256, 128):
        if tn <= cap and N % tn == 0:
            return tn
    # TODO(synk): N not a multiple of 128 falls back to a single tile; tiling a
    # ragged N would need a masked accumulate (bias+ReLU make pad rows nonzero).
    return N


def pointnext_model_forward(pc_feat, xyz, fp, n_classes):
    """pc_feat: (B, in_dim, N) channels-first (torch layout); xyz: (B, N, 3)."""
    B, in_dim, N = pc_feat.shape
    E = fp["enc_vec"].shape[1]
    n_pad = fp["w3"].shape[1]
    h1 = fp["w1"].shape[1]
    h2 = fp["w2"].shape[1]

    # Channels-last so channels map to lanes; bf16 halves HBM/DMA bytes. xyz is
    # passed separately (backbone weight split) so no concatenated copy is made.
    pf_cl = jnp.transpose(pc_feat, (0, 2, 1)).astype(jnp.bfloat16)   # (B, N, in_dim)
    xyz_b = xyz.astype(jnp.bfloat16)                                 # (B, N, 3)

    tn = _choose_tile_n(N, B, E)
    grid = (N // tn,)

    operands = (pf_cl, xyz_b, fp["wf"], fp["wx"], fp["enc_vec"],
                fp["w1"], fp["w2"], fp["w3"], fp["head_vec"])
    flops = 2 * B * N * (in_dim + 3) * E + 2 * B * (E * h1 + h1 * h2 + h2 * n_pad)
    bytes_acc = sum(int(a.size) * a.dtype.itemsize for a in operands) \
        + B * n_pad * 4 + B * E * 4

    probs_pad, feats = pl.pallas_call(
        functools.partial(fused_kernel, inv_n=1.0 / N),
        grid=grid,
        in_specs=[
            pl.BlockSpec((B, tn, in_dim), lambda n: (0, n, 0)),
            pl.BlockSpec((B, tn, 3), lambda n: (0, n, 0)),
            pl.BlockSpec(fp["wf"].shape, lambda n: (0, 0)),
            pl.BlockSpec(fp["wx"].shape, lambda n: (0, 0)),
            pl.BlockSpec(fp["enc_vec"].shape, lambda n: (0, 0)),
            pl.BlockSpec(fp["w1"].shape, lambda n: (0, 0)),
            pl.BlockSpec(fp["w2"].shape, lambda n: (0, 0)),
            pl.BlockSpec(fp["w3"].shape, lambda n: (0, 0)),
            pl.BlockSpec(fp["head_vec"].shape, lambda n: (0, 0)),
        ],
        out_specs=(
            pl.BlockSpec((B, n_pad), lambda n: (0, 0)),
            pl.BlockSpec((B, E), lambda n: (0, 0)),
        ),
        out_shape=(jax.ShapeDtypeStruct((B, n_pad), jnp.float32),
                   jax.ShapeDtypeStruct((B, E), jnp.float32)),
        scratch_shapes=[pltpu.VMEM((B, E), jnp.float32)],
        compiler_params=pltpu.CompilerParams(
            # N is a reduction axis carrying the pooled accumulator -> arbitrary.
            dimension_semantics=("arbitrary",)),
        cost_estimate=pl.CostEstimate(flops=int(flops),
                                      transcendentals=int(B * n_pad),
                                      bytes_accessed=int(bytes_acc)),
    )(*operands)

    return probs_pad[:, :n_classes], feats


# -------------------- Parameters --------------------
def init_params(key, in_dim, emb_dims, n_classes):
    """Raw, torch-layout parameters (as the nn.Module would hold them)."""
    C = in_dim + 3  # backbone sees concat([pc_feat, xyz]) per point
    ks = jax.random.split(key, 12)
    p = {}
    # backbone point-wise MLP
    p["wb"] = 0.1 * jax.random.normal(ks[0], (C, emb_dims), jnp.float32)
    p["bb"] = 0.01 * jax.random.normal(ks[1], (emb_dims,), jnp.float32)
    # encoder BatchNorm1d(emb_dims) running stats + affine
    p["bn_gamma"] = 1.0 + 0.1 * jax.random.normal(ks[2], (emb_dims,), jnp.float32)
    p["bn_beta"] = 0.05 * jax.random.normal(ks[3], (emb_dims,), jnp.float32)
    p["bn_mean"] = 0.02 * jax.random.normal(ks[4], (emb_dims,), jnp.float32)
    p["bn_var"] = jnp.abs(1.0 + 0.1 * jax.random.normal(ks[5], (emb_dims,), jnp.float32))
    # classifier head
    p["w1"] = 0.05 * jax.random.normal(ks[6], (emb_dims, 512), jnp.float32)
    p["b1"] = jnp.zeros((512,), jnp.float32)
    p["g1"] = jnp.ones((512,), jnp.float32)
    p["be1"] = jnp.zeros((512,), jnp.float32)
    p["m1"] = jnp.zeros((512,), jnp.float32)
    p["v1"] = jnp.ones((512,), jnp.float32)
    p["w2"] = 0.05 * jax.random.normal(ks[7], (512, 256), jnp.float32)
    p["b2"] = jnp.zeros((256,), jnp.float32)
    p["g2"] = jnp.ones((256,), jnp.float32)
    p["be2"] = jnp.zeros((256,), jnp.float32)
    p["m2"] = jnp.zeros((256,), jnp.float32)
    p["v2"] = jnp.ones((256,), jnp.float32)
    p["w3"] = 0.05 * jax.random.normal(ks[8], (256, n_classes), jnp.float32)
    p["b3"] = 0.01 * jax.random.normal(ks[9], (n_classes,), jnp.float32)
    return p


def fold_params(p, in_dim, n_classes):
    """Host-side prep: fold eval BatchNorms, split the backbone weight, pad the
    class dim to a lane-dense multiple of 128, and pack the small bias rows."""
    n_pad = max(128, ((n_classes + 127) // 128) * 128)

    # encoder BN is a per-channel affine -> commutes with the mean-pool; fold to a
    # single post-pool scale/shift.
    s_e = p["bn_gamma"] * jax.lax.rsqrt(p["bn_var"] + BN_EPS)
    enc_vec = jnp.stack([p["bb"], s_e, p["bn_beta"] - p["bn_mean"] * s_e],
                        axis=0).astype(jnp.float32)                      # (3, E)

    # backbone weight split: rows acting on pc_feat vs xyz (== concat semantics)
    wf = p["wb"][:in_dim].astype(jnp.bfloat16)                           # (in_dim, E)
    wx = p["wb"][in_dim:].astype(jnp.bfloat16)                           # (3, E)

    # classifier BNs folded into the adjacent Linear layers
    s1 = p["g1"] * jax.lax.rsqrt(p["v1"] + BN_EPS)
    w1 = (p["w1"] * s1[None, :]).astype(jnp.float32)
    b1 = (p["b1"] - p["m1"]) * s1 + p["be1"]
    s2 = p["g2"] * jax.lax.rsqrt(p["v2"] + BN_EPS)
    w2 = (p["w2"] * s2[None, :]).astype(jnp.float32)
    b2 = (p["b2"] - p["m2"]) * s2 + p["be2"]

    # lane-dense class dim; pad logits masked with a large negative bias
    w3 = jnp.zeros((p["w3"].shape[0], n_pad), jnp.float32).at[:, :n_classes].set(p["w3"])
    b3 = jnp.full((n_pad,), -1e30, jnp.float32).at[:n_classes].set(p["b3"])

    head_w = max(w1.shape[1], n_pad)
    head_vec = jnp.zeros((3, head_w), jnp.float32)
    head_vec = head_vec.at[0, :w1.shape[1]].set(b1)
    head_vec = head_vec.at[1, :w2.shape[1]].set(b2)
    head_vec = head_vec.at[2, :n_pad].set(b3)

    return {"wf": wf, "wx": wx, "enc_vec": enc_vec,
            "w1": w1, "w2": w2, "w3": w3, "head_vec": head_vec}


if __name__ == "__main__":
    # config: {'encoder': 's', 'emb_dims': 32, 'dp_pc': 0.5}
    B, in_dim, N = 2, 4, 64
    emb_dims, n_classes = 32, 8

    key = jax.random.PRNGKey(0)
    k_feat, k_xyz, k_param = jax.random.split(key, 3)
    pc_feat = jax.random.normal(k_feat, (B, in_dim, N), jnp.float32)   # (B, C, N) torch layout
    xyz = jax.random.normal(k_xyz, (B, N, 3), jnp.float32)

    raw = init_params(k_param, in_dim, emb_dims, n_classes)
    folded = fold_params(raw, in_dim, n_classes)

    fwd = jax.jit(functools.partial(pointnext_model_forward, n_classes=n_classes))
    probs, pc_feats = fwd(pc_feat, xyz, folded)
    jax.block_until_ready((probs, pc_feats))

    assert probs.shape == (B, n_classes)
    assert pc_feats.shape == (B, emb_dims)
    # softmax rows sum to 1
    assert bool(jnp.allclose(jnp.sum(probs, axis=1), 1.0, atol=1e-5))
    print("KERNEL_OK")
</pallas_src>

<mosaic_0001>
module attributes {stable_mosaic.version = 11 : i64} {
  func.func @fused_kernel(%arg0: i32, %arg1: memref<2x64x4xbf16, #tpu.memory_space<vmem>>, %arg2: memref<2x64x3xbf16, #tpu.memory_space<vmem>>, %arg3: memref<4x32xbf16, #tpu.memory_space<vmem>>, %arg4: memref<3x32xbf16, #tpu.memory_space<vmem>>, %arg5: memref<3x32xf32, #tpu.memory_space<vmem>>, %arg6: memref<32x512xf32, #tpu.memory_space<vmem>>, %arg7: memref<512x256xf32, #tpu.memory_space<vmem>>, %arg8: memref<256x128xf32, #tpu.memory_space<vmem>>, %arg9: memref<3x512xf32, #tpu.memory_space<vmem>>, %arg10: memref<2x128xf32, #tpu.memory_space<vmem>>, %arg11: memref<2x32xf32, #tpu.memory_space<vmem>>, %arg12: memref<2x32xf32, #tpu.memory_space<vmem>>) attributes {dimension_semantics = [#tpu.dimension_semantics<arbitrary>], iteration_bounds = array<i64: 1>, scalar_prefetch = 0 : i64, scratch_operands = 1 : i64, tpu.core_type = #tpu.core_type<tc>, window_params = [{transform_indices = @transform_0, window_bounds = array<i64: 2, 64, 4>}, {transform_indices = @transform_1, window_bounds = array<i64: 2, 64, 3>}, {pipeline_mode = #tpu.pipeline_mode<synchronous>, transform_indices = @transform_2, window_bounds = array<i64: 4, 32>}, {pipeline_mode = #tpu.pipeline_mode<synchronous>, transform_indices = @transform_3, window_bounds = array<i64: 3, 32>}, {pipeline_mode = #tpu.pipeline_mode<synchronous>, transform_indices = @transform_4, window_bounds = array<i64: 3, 32>}, {pipeline_mode = #tpu.pipeline_mode<synchronous>, transform_indices = @transform_5, window_bounds = array<i64: 32, 512>}, {pipeline_mode = #tpu.pipeline_mode<synchronous>, transform_indices = @transform_6, window_bounds = array<i64: 512, 256>}, {pipeline_mode = #tpu.pipeline_mode<synchronous>, transform_indices = @transform_7, window_bounds = array<i64: 256, 128>}, {pipeline_mode = #tpu.pipeline_mode<synchronous>, transform_indices = @transform_8, window_bounds = array<i64: 3, 512>}, {pipeline_mode = #tpu.pipeline_mode<synchronous>, transform_indices = @transform_9, window_bounds = array<i64: 2, 128>}, {pipeline_mode = #tpu.pipeline_mode<synchronous>, transform_indices = @transform_10, window_bounds = array<i64: 2, 32>}]} {
    %c0_i32 = arith.constant 0 : i32
    %0 = arith.cmpi eq, %arg0, %c0_i32 : i32
    %1 = arith.extui %0 : i1 to i32
    %c0_i32_0 = arith.constant 0 : i32
    %2 = arith.cmpi ne, %1, %c0_i32_0 : i32
    scf.if %2 {
      %cst_21 = arith.constant 0.000000e+00 : f32
      %25 = vector.broadcast %cst_21 : f32 to vector<2x32xf32>
      %c0_22 = arith.constant 0 : index
      %c0_23 = arith.constant 0 : index
      %26 = vector.load %arg12[%c0_22, %c0_23] : memref<2x32xf32, #tpu.memory_space<vmem>>, vector<2x32xf32>
      tpu.vector_store %arg12[%c0_22, %c0_23], %25 {strides = array<i32>} : memref<2x32xf32, #tpu.memory_space<vmem>>, vector<2x32xf32>,
    } else {
    }
    %c0 = arith.constant 0 : index
    %c0_1 = arith.constant 0 : index
    %c0_2 = arith.constant 0 : index
    %3 = vector.load %arg1[%c0, %c0_1, %c0_2] : memref<2x64x4xbf16, #tpu.memory_space<vmem>>, vector<2x64x4xbf16>
    %4 = vector.shape_cast %3 : vector<2x64x4xbf16> to vector<128x4xbf16>
    %c0_3 = arith.constant 0 : index
    %c0_4 = arith.constant 0 : index
    %c0_5 = arith.constant 0 : index
    %5 = vector.load %arg2[%c0_3, %c0_4, %c0_5] : memref<2x64x3xbf16, #tpu.memory_space<vmem>>, vector<2x64x3xbf16>
    %6 = vector.shape_cast %5 : vector<2x64x3xbf16> to vector<128x3xbf16>
    %c0_6 = arith.constant 0 : index
    %c0_7 = arith.constant 0 : index
    %7 = vector.load %arg3[%c0_6, %c0_7] : memref<4x32xbf16, #tpu.memory_space<vmem>>, vector<4x32xbf16>
    %cst = arith.constant dense<0.000000e+00> : vector<128x32xf32>
    %8 = tpu.matmul %4, %7, %cst {dimension_numbers = #tpu.dot_dimension_numbers<[1], [0], [0], [1], [0, 0, 1, 1], [], []>} : vector<128x4xbf16>, vector<4x32xbf16>, vector<128x32xf32> -> vector<128x32xf32>
    %c0_8 = arith.constant 0 : index
    %c0_9 = arith.constant 0 : index
    %9 = vector.load %arg4[%c0_8, %c0_9] : memref<3x32xbf16, #tpu.memory_space<vmem>>, vector<3x32xbf16>
    %cst_10 = arith.constant dense<0.000000e+00> : vector<128x32xf32>
    %10 = tpu.matmul %6, %9, %cst_10 {dimension_numbers = #tpu.dot_dimension_numbers<[1], [0], [0], [1], [0, 0, 1, 1], [], []>} : vector<128x3xbf16>, vector<3x32xbf16>, vector<128x32xf32> -> vector<128x32xf32>
    %11 = arith.addf %8, %10 : vector<128x32xf32>
    %c0_11 = arith.constant 0 : index
    %c0_12 = arith.constant 0 : index
    %12 = vector.load %arg5[%c0_11, %c0_12] : memref<3x32xf32, #tpu.memory_space<vmem>>, vector<1x32xf32>
    %13 = vector.broadcast %12 : vector<1x32xf32> to vector<128x32xf32>
    %14 = arith.addf %11, %13 : vector<128x32xf32>
    %cst_13 = arith.constant 0.000000e+00 : f32
    %15 = vector.broadcast %cst_13 : f32 to vector<128x32xf32>
    %16 = arith.maximumf %14, %15 : vector<128x32xf32>
    %c0_14 = arith.constant 0 : index
    %c0_15 = arith.constant 0 : index
    %17 = vector.load %arg12[%c0_14, %c0_15] : memref<2x32xf32, #tpu.memory_space<vmem>>, vector<2x32xf32>
    %18 = vector.shape_cast %16 : vector<128x32xf32> to vector<2x64x32xf32>
    %cst_16 = arith.constant dense<0.000000e+00> : vector<2x32xf32>
    %19 = vector.multi_reduction <add>, %18, %cst_16 [1] : vector<2x64x32xf32> to vector<2x32xf32>
    %20 = arith.addf %17, %19 : vector<2x32xf32>
    %c0_17 = arith.constant 0 : index
    %c0_18 = arith.constant 0 : index
    %21 = vector.load %arg12[%c0_17, %c0_18] : memref<2x32xf32, #tpu.memory_space<vmem>>, vector<2x32xf32>
    tpu.vector_store %arg12[%c0_17, %c0_18], %20 {strides = array<i32>} : memref<2x32xf32, #tpu.memory_space<vmem>>, vector<2x32xf32>,
    %c0_i32_19 = arith.constant 0 : i32
    %22 = arith.cmpi eq, %arg0, %c0_i32_19 : i32
    %23 = arith.extui %22 : i1 to i32
    %c0_i32_20 = arith.constant 0 : i32
    %24 = arith.cmpi ne, %23, %c0_i32_20 : i32
    scf.if %24 {
      %c0_21 = arith.constant 0 : index
      %c0_22 = arith.constant 0 : index
      %25 = vector.load %arg12[%c0_21, %c0_22] : memref<2x32xf32, #tpu.memory_space<vmem>>, vector<2x32xf32>
      %cst_23 = arith.constant 1.562500e-02 : f32
      %26 = vector.broadcast %cst_23 : f32 to vector<2x32xf32>
      %27 = arith.mulf %25, %26 : vector<2x32xf32>
      %c1 = arith.constant 1 : index
      %c0_24 = arith.constant 0 : index
      %28 = vector.load %arg5[%c1, %c0_24] : memref<3x32xf32, #tpu.memory_space<vmem>>, vector<1x32xf32>
      %29 = vector.broadcast %28 : vector<1x32xf32> to vector<2x32xf32>
      %30 = arith.mulf %27, %29 : vector<2x32xf32>
      %c2 = arith.constant 2 : index
      %c0_25 = arith.constant 0 : index
      %31 = vector.load %arg5[%c2, %c0_25] : memref<3x32xf32, #tpu.memory_space<vmem>>, vector<1x32xf32>
      %32 = vector.broadcast %31 : vector<1x32xf32> to vector<2x32xf32>
      %33 = arith.addf %30, %32 : vector<2x32xf32>
      %cst_26 = arith.constant 0.000000e+00 : f32
      %34 = vector.broadcast %cst_26 : f32 to vector<2x32xf32>
      %35 = arith.maximumf %33, %34 : vector<2x32xf32>
      %c0_27 = arith.constant 0 : index
      %c0_28 = arith.constant 0 : index
      %36 = vector.load %arg11[%c0_27, %c0_28] : memref<2x32xf32, #tpu.memory_space<vmem>>, vector<2x32xf32>
      tpu.vector_store %arg11[%c0_27, %c0_28], %35 {strides = array<i32>} : memref<2x32xf32, #tpu.memory_space<vmem>>, vector<2x32xf32>,
      %c0_29 = arith.constant 0 : index
      %c0_30 = arith.constant 0 : index
      %37 = vector.load %arg6[%c0_29, %c0_30] : memref<32x512xf32, #tpu.memory_space<vmem>>, vector<32x512xf32>
      %cst_31 = arith.constant dense<0.000000e+00> : vector<2x512xf32>
      %38 = tpu.matmul %35, %37, %cst_31 {dimension_numbers = #tpu.dot_dimension_numbers<[1], [0], [0], [1], [0, 0, 1, 1], [], []>} : vector<2x32xf32>, vector<32x512xf32>, vector<2x512xf32> -> vector<2x512xf32>
      %c0_32 = arith.constant 0 : index
      %c0_33 = arith.constant 0 : index
      %39 = vector.load %arg9[%c0_32, %c0_33] : memref<3x512xf32, #tpu.memory_space<vmem>>, vector<1x512xf32>
      %40 = vector.broadcast %39 : vector<1x512xf32> to vector<2x512xf32>
      %41 = arith.addf %38, %40 : vector<2x512xf32>
      %cst_34 = arith.constant 0.000000e+00 : f32
      %42 = vector.broadcast %cst_34 : f32 to vector<2x512xf32>
      %43 = arith.maximumf %41, %42 : vector<2x512xf32>
      %c0_35 = arith.constant 0 : index
      %c0_36 = arith.constant 0 : index
      %44 = vector.load %arg7[%c0_35, %c0_36] : memref<512x256xf32, #tpu.memory_space<vmem>>, vector<512x256xf32>
      %cst_37 = arith.constant dense<0.000000e+00> : vector<2x256xf32>
      %45 = tpu.matmul %43, %44, %cst_37 {dimension_numbers = #tpu.dot_dimension_numbers<[1], [0], [0], [1], [0, 0, 1, 1], [], []>} : vector<2x512xf32>, vector<512x256xf32>, vector<2x256xf32> -> vector<2x256xf32>
      %c1_38 = arith.constant 1 : index
      %c0_39 = arith.constant 0 : index
      %46 = vector.load %arg9[%c1_38, %c0_39] : memref<3x512xf32, #tpu.memory_space<vmem>>, vector<1x256xf32>
      %47 = vector.broadcast %46 : vector<1x256xf32> to vector<2x256xf32>
      %48 = arith.addf %45, %47 : vector<2x256xf32>
      %cst_40 = arith.constant 0.000000e+00 : f32
      %49 = vector.broadcast %cst_40 : f32 to vector<2x256xf32>
      %50 = arith.maximumf %48, %49 : vector<2x256xf32>
      %c0_41 = arith.constant 0 : index
      %c0_42 = arith.constant 0 : index
      %51 = vector.load %arg8[%c0_41, %c0_42] : memref<256x128xf32, #tpu.memory_space<vmem>>, vector<256x128xf32>
      %cst_43 = arith.constant dense<0.000000e+00> : vector<2x128xf32>
      %52 = tpu.matmul %50, %51, %cst_43 {dimension_numbers = #tpu.dot_dimension_numbers<[1], [0], [0], [1], [0, 0, 1, 1], [], []>} : vector<2x256xf32>, vector<256x128xf32>, vector<2x128xf32> -> vector<2x128xf32>
      %c2_44 = arith.constant 2 : index
      %c0_45 = arith.constant 0 : index
      %53 = vector.load %arg9[%c2_44, %c0_45] : memref<3x512xf32, #tpu.memory_space<vmem>>, vector<1x128xf32>
      %54 = vector.broadcast %53 : vector<1x128xf32> to vector<2x128xf32>
      %55 = arith.addf %52, %54 : vector<2x128xf32>
      %cst_46 = arith.constant dense<0xFF800000> : vector<2xf32>
      %56 = vector.multi_reduction <maximumf>, %55, %cst_46 [1] : vector<2x128xf32> to vector<2xf32>
      %57 = vector.shape_cast %56 : vector<2xf32> to vector<2x1xf32>
      %58 = vector.broadcast %57 : vector<2x1xf32> to vector<2x128xf32>
      %59 = arith.subf %55, %58 : vector<2x128xf32>
      %60 = math.exp %59 : vector<2x128xf32>
      %cst_47 = arith.constant dense<0.000000e+00> : vector<2xf32>
      %61 = vector.multi_reduction <add>, %60, %cst_47 [1] : vector<2x128xf32> to vector<2xf32>
      %62 = vector.shape_cast %61 : vector<2xf32> to vector<2x1xf32>
      %63 = vector.broadcast %62 : vector<2x1xf32> to vector<2x128xf32>
      %64 = arith.divf %60, %63 : vector<2x128xf32>
      %c0_48 = arith.constant 0 : index
      %c0_49 = arith.constant 0 : index
      %65 = vector.load %arg10[%c0_48, %c0_49] : memref<2x128xf32, #tpu.memory_space<vmem>>, vector<2x128xf32>
      tpu.vector_store %arg10[%c0_48, %c0_49], %64 {strides = array<i32>} : memref<2x128xf32, #tpu.memory_space<vmem>>, vector<2x128xf32>,
    } else {
    }
    return
  }
  func.func @transform_0(%arg0: i32) -> (i32, i32, i32) {
    %c0_i32 = arith.constant 0 : i32
    %c0_i32_0 = arith.constant 0 : i32
    %c0_i32_1 = arith.constant 0 : i32
    return %c0_i32, %arg0, %c0_i32_0 : i32, i32, i32
  }
  func.func @transform_1(%arg0: i32) -> (i32, i32, i32) {
    %c0_i32 = arith.constant 0 : i32
    %c0_i32_0 = arith.constant 0 : i32
    %c0_i32_1 = arith.constant 0 : i32
    return %c0_i32, %arg0, %c0_i32_0 : i32, i32, i32
  }
  func.func @transform_2(%arg0: i32) -> (i32, i32) {
    %c0_i32 = arith.constant 0 : i32
    %c0_i32_0 = arith.constant 0 : i32
    %c0_i32_1 = arith.constant 0 : i32
    return %c0_i32, %c0_i32_0 : i32, i32
  }
  func.func @transform_3(%arg0: i32) -> (i32, i32) {
    %c0_i32 = arith.constant 0 : i32
    %c0_i32_0 = arith.constant 0 : i32
    %c0_i32_1 = arith.constant 0 : i32
    return %c0_i32, %c0_i32_0 : i32, i32
  }
  func.func @transform_4(%arg0: i32) -> (i32, i32) {
    %c0_i32 = arith.constant 0 : i32
    %c0_i32_0 = arith.constant 0 : i32
    %c0_i32_1 = arith.constant 0 : i32
    return %c0_i32, %c0_i32_0 : i32, i32
  }
  func.func @transform_5(%arg0: i32) -> (i32, i32) {
    %c0_i32 = arith.constant 0 : i32
    %c0_i32_0 = arith.constant 0 : i32
    %c0_i32_1 = arith.constant 0 : i32
    return %c0_i32, %c0_i32_0 : i32, i32
  }
  func.func @transform_6(%arg0: i32) -> (i32, i32) {
    %c0_i32 = arith.constant 0 : i32
    %c0_i32_0 = arith.constant 0 : i32
    %c0_i32_1 = arith.constant 0 : i32
    return %c0_i32, %c0_i32_0 : i32, i32
  }
  func.func @transform_7(%arg0: i32) -> (i32, i32) {
    %c0_i32 = arith.constant 0 : i32
    %c0_i32_0 = arith.constant 0 : i32
    %c0_i32_1 = arith.constant 0 : i32
    return %c0_i32, %c0_i32_0 : i32, i32
  }
  func.func @transform_8(%arg0: i32) -> (i32, i32) {
    %c0_i32 = arith.constant 0 : i32
    %c0_i32_0 = arith.constant 0 : i32
    %c0_i32_1 = arith.constant 0 : i32
    return %c0_i32, %c0_i32_0 : i32, i32
  }
  func.func @transform_9(%arg0: i32) -> (i32, i32) {
    %c0_i32 = arith.constant 0 : i32
    %c0_i32_0 = arith.constant 0 : i32
    %c0_i32_1 = arith.constant 0 : i32
    return %c0_i32, %c0_i32_0 : i32, i32
  }
  func.func @transform_10(%arg0: i32) -> (i32, i32) {
    %c0_i32 = arith.constant 0 : i32
    %c0_i32_0 = arith.constant 0 : i32
    %c0_i32_1 = arith.constant 0 : i32
    return %c0_i32, %c0_i32_0 : i32, i32
  }
}

</mosaic_0001>

<bundles_post_ra>
// kernel: pointnext_model_forward.1
= control target key start
LH: loop header
LB: loop body
LE: loop exit
PB: predicated region body
PF: predicated region fallthrough
CT: control target
= control target key end

     0   :  { %16 = vsyncpa [#allocation4], 0  ;;  %s1929_s0 = inlined_call_operand.vmem [shape: bf16[2,64,4], index: 0, kind: input, shape index: {}]   ;;  %s1930_s1 = inlined_call_operand.vmem [shape: bf16[2,64,3], index: 1, kind: input, shape index: {}]   ;;  %s1931_s2 = inlined_call_operand.vmem [shape: bf16[4,32], index: 2, kind: input, shape index: {}]   ;;  %s1932_s3 = inlined_call_operand.vmem [shape: bf16[3,32], index: 3, kind: input, shape index: {}]   ;;  %s1933_s4 = inlined_call_operand.vmem [shape: f32[3,32], index: 4, kind: input, shape index: {}]   ;;  %s1934_s5 = inlined_call_operand.vmem [shape: f32[32,512], index: 5, kind: input, shape index: {}]   ;;  %s1935_s6 = inlined_call_operand.hbm [shape: f32[512,256], index: 6, kind: input, shape index: {}]   ;;  %s1936_s7 = inlined_call_operand.hbm [shape: f32[256,128], index: 7, kind: input, shape index: {}]   ;;  %s1937_s8 = inlined_call_operand.vmem [shape: f32[3,512], index: 8, kind: input, shape index: {}]   ;;  %s1938_s9 = inlined_call_operand.hbm [shape: f32[2,128], index: 9, kind: output, shape index: {0}]   ;;  %s1939_s10 = inlined_call_operand.hbm [shape: f32[2,32], index: 10, kind: output, shape index: {1}]  }
   0x1   :  { %17 = vsyncpa [#allocation7], 0 }
   0x2   :  { %18 = vsyncpa [#allocation5], 0 }
   0x3   :  { %19 = vsyncpa [#allocation10], 0  ;;  %s1619_s13 = smov [#allocation3]   ;;  %s1523_s17 = scalar_lea.hbm %s1935_s6, 16384 }
   0x4   :  { %s37_s14 = sshll.u32 %s1619_s13, 4  ;;  %p1524_p0 = scmp.ne.s32.totalorder %s1935_s6, %s1523_s17  ;;  %s38_s14 = int_to_ptr.vmem [resolvable:$true] %s37_s14 }
   0x5   :  { %p1527_p1 = scmp.lt.u32.totalorder %s1523_s17, %s1935_s6 }
   0x7   :  { %p1529_p2 = pnand %p1527_p1, %p1524_p0 }
   0x9   :  { %1532 = shalt.err (!%p1529_p2)
}
   0xa   :  { %s1533_s22 = scalar_lea.vmem %s38_s14, 16384  ;;  %p1538_p4 = scmp.lt.s32.totalorder %s38_s14, %s38_s14 }
   0xb   :  { %p1534_p3 = scmp.ne.s32.totalorder %s38_s14, %s1533_s22  ;;  %p1539_p5 = scmp.lt.s32.totalorder %s1533_s22, %s1533_s22 }
   0xd   :  { %p1540_p6 = por %p1539_p5, %p1538_p4 }
   0xf   :  { %p1541_p7 = pnand %p1540_p6, %p1534_p3 }
  0x11   :  { %1544 = shalt.err (!%p1541_p7)
}
  0x12   :  { %s1620_s23 = smov 256   ;;  %s1621_s24 = smov 16  }
  0x13   :  { %43 = dma.hbm_to_vmem [thread:$0]  %s1935_s6, 16384, %s38_s14, [#allocation4], %s1620_s23, %s1620_s23, %s1621_s24  }
  0x14   :  { %s1622_s27 = smov [#allocation6]   ;;  %s1545_s11 = scalar_lea.hbm %s1936_s7, 4096 }
  0x15   :  { %s49_s28 = sshll.u32 %s1622_s27, 4  ;;  %p1546_p8 = scmp.ne.s32.totalorder %s1936_s7, %s1545_s11  ;;  %s50_s28 = int_to_ptr.vmem [resolvable:$true] %s49_s28 }
  0x16   :  { %p1549_p9 = scmp.lt.u32.totalorder %s1545_s11, %s1936_s7 }
  0x18   :  { %p1551_p10 = pnand %p1549_p9, %p1546_p8 }
  0x1a   :  { %1554 = shalt.err (!%p1551_p10)
}
  0x1b   :  { %s1555_s17 = scalar_lea.vmem %s50_s28, 4096  ;;  %p1560_p12 = scmp.lt.s32.totalorder %s50_s28, %s50_s28 }
  0x1c   :  { %p1556_p11 = scmp.ne.s32.totalorder %s50_s28, %s1555_s17  ;;  %p1561_p13 = scmp.lt.s32.totalorder %s1555_s17, %s1555_s17 }
  0x1e   :  { %p1562_p0 = por %p1561_p13, %p1560_p12 }
  0x20   :  { %p1563_p1 = pnand %p1562_p0, %p1556_p11 }
  0x22   :  { %1566 = shalt.err (!%p1563_p1)
}
  0x23   :  { %s1623_s6 = smov 128   ;;  %s1624_s14 = smov 8  }
  0x24   :  { %55 = dma.hbm_to_vmem [thread:$0]  %s1936_s7, 4096, %s50_s28, [#allocation7], %s1623_s6, %s1623_s6, %s1624_s14  }
  0x25   :  { %1611 = dma.done.wait [#allocation4], 16384  }
  0x26   :  { %1612 = vsyncadd [#allocation4], 4294950912 }
  0x27   :  { %1613 = dma.done.wait [#allocation7], 4096  }
  0x28   :  { %1614 = vsyncadd [#allocation7], 4294963200  ;;  %vm170_vm0 = vcmask 1040384   ;;  %vm171_vm1 = vcmask 1041408   ;;  %v1625_v0 = vmov 65535   ;;  %vm314_vm2 = vcmask 31744  }
  0x29   :  { %v172_v1 = vsel %vm170_vm0, 4294967295, %v1625_v0  ;;  %v103_v3 = vld [vmem:[%s1931_s2] sm:$0x3]  ;;  %v1504_v8 = vld [vmem:[%s1929_s0 + $0x8] sm:$0xff]   ;;  %vm145_vm3 = vcmask 23552   ;;  %v1507_v11 = vld [vmem:[%s1929_s0 + $0x10] sm:$0xff]  }
  0x2a   :  { %v173_v2 = vsel %vm171_vm1, %v172_v1, 0  ;;  %v104_v4 = vld [vmem:[%s1932_s3] sm:$0x3]  ;;  %1492 = vmatprep.subr.msk.bf16.mxu0 %vm171_vm1, %v103_v3  ;;  %v340_v5 = vsel %vm171_vm1, %v103_v3, 0  ;;  %v1506_v10 = vld [vmem:[%s1930_s1 + $0x8] sm:$0xff]   ;;  %v1509_v12 = vld [vmem:[%s1930_s1 + $0x10] sm:$0xff]  }
  0x2b   :  { %v175_v6 = vand.u32 %v173_v2, %v104_v4  ;;  %v1503_v7 = vld [vmem:[%s1929_s0] sm:$0xff]   ;;  %1279 = vmatpush3.bf16.msra.mxu0 %v340_v5  ;;  %v1508_v13 = vld [vmem:[%s1929_s0 + $0x18] sm:$0xff]   ;;  %v1512_v17 = vld [vmem:[%s1929_s0 + $0x28] sm:$0xff]   ;;  %vm69_vm4 = vcmask 254976   ;;  %v1626_v23 = vmov 0.0   ;;  %vm477_vm5 = vcmask 261120  }
  0x2c   :  { %1280 = vmatprep.mubr.msk.bf16.mxu0 %vm314_vm2, %v1503_v7  ;;  %v1505_v9 = vld [vmem:[%s1930_s1] sm:$0xff]   ;;  %v1510_v15 = vld [vmem:[%s1930_s1 + $0x18] sm:$0xff]   ;;  %v1515_v18 = vld [vmem:[%s1929_s0 + $0x30] sm:$0xff]   ;;  %70 = vst.msk [vmem:[#allocation2] sm:$0x3] %vm69_vm4, %v1626_v23  ;;  %vm522_vm6 = vcmask 1041409  }
  0x2d   :  { %1260 = vmatprep.subr.bf16.mxu1 %v175_v6  ;;  %1262 = vmatprep.mubr.msk.bf16.mxu1 %vm145_vm3, %v1505_v9  ;;  %v1511_v14 = vld [vmem:[%s1929_s0 + $0x20] sm:$0xff]   ;;  %v1514_v19 = vld [vmem:[%s1930_s1 + $0x28] sm:$0xff]   ;;  %v1517_v20 = vld [vmem:[%s1930_s1 + $0x30] sm:$0xff]   ;;  %s1627_s22 = smov [#allocation9]  }
  0x2e   :  { %1261 = vmatpush3.bf16.msra.mxu1 %v175_v6  ;;  %1281 = vmatmul.mubr.msk.bf16.vlgmr.msra.gmra.mrb[0].mxu0 %vm314_vm2, %v1504_v8  ;;  %v1513_v16 = vld [vmem:[%s1930_s1 + $0x20] sm:$0xff]   ;;  %v1516_v21 = vld [vmem:[%s1929_s0 + $0x38] sm:$0xff]   ;;  %v548_v24 = vld [vmem:[%s1934_s5 + $0x8] sm:$0xff]  ;;  %s1154_s23 = sshll.u32 %s1627_s22, 4  ;;  %s1155_s23 = int_to_ptr.vmem [resolvable:$true] %s1154_s23 }
  0x2f   :  { %1284 = vmatprep.mubr.msk.bf16.mxu0 %vm314_vm2, %v1507_v11  ;;  %v1518_v22 = vld [vmem:[%s1930_s1 + $0x38] sm:$0xff]   ;;  %v552_v25 = vld [vmem:[%s1934_s5 + $0x28] sm:$0xff]  ;;  %v547_v26 = vld [vmem:[%s1934_s5] sm:$0xff]  ;;  %s1567_s7 = scalar_lea.vmem %s1155_s23, 32  ;;  %p1572_p3 = scmp.lt.s32.totalorder %s1155_s23, %s1155_s23 }
  0x30   :  { %v1296_v27 = vpack.c.bf16 %v552_v25, %v548_v24  ;;  %v551_v28 = vld [vmem:[%s1934_s5 + $0x20] sm:$0xff]  ;;  %v556_v29 = vld [vmem:[%s1934_s5 + $0x48] sm:$0xff]  ;;  %v550_v36 = vld [vmem:[%s1934_s5 + $0x18] sm:$0xff]  ;;  %p1568_p2 = scmp.ne.s32.totalorder %s1155_s23, %s1567_s7  ;;  %p1573_p4 = scmp.lt.s32.totalorder %s1567_s7, %s1567_s7 }
  0x31   :  { %1263 = vmatmul.mubr.msk.bf16.vlgmr.msra.gmra.mrb[0].mxu1 %vm145_vm3, %v1506_v10  ;;  %v560_v30 = vld [vmem:[%s1934_s5 + $0x68] sm:$0xff]  ;;  %v1298_v31 = vpack.c.bf16 %v551_v28, %v547_v26  ;;  %v555_v33 = vld [vmem:[%s1934_s5 + $0x40] sm:$0xff]  ;;  %v554_v37 = vld [vmem:[%s1934_s5 + $0x38] sm:$0xff] }
  0x32   :  { %1266 = vmatprep.mubr.msk.bf16.mxu1 %vm145_vm3, %v1509_v12  ;;  %v1300_v32 = vpack.c.bf16 %v560_v30, %v556_v29  ;;  %v559_v34 = vld [vmem:[%s1934_s5 + $0x60] sm:$0xff]  ;;  %1297 = vmatprep.subr.bf16.mxu1 %v1296_v27  ;;  %v1304_v38 = vpack.c.bf16 %v554_v37, %v550_v36  ;;  %v735_v39 = vld [vmem:[#allocation3 + $0x8] sm:$0xff]  ;;  %v736_v43 = vld [vmem:[#allocation3 + $0x10] sm:$0xff]  ;;  %p1574_p5 = por %p1573_p4, %p1572_p3 }
  0x33   :  { %1299 = vmatpush1.bf16.msra.mxu1 %v1298_v31  ;;  %v1302_v35 = vpack.c.bf16 %v559_v34, %v555_v33  ;;  %v737_v40 = vld [vmem:[#allocation3 + $0x18] sm:$0xff]  ;;  %v734_v41 = vld [vmem:[#allocation3] sm:$0xff]  ;;  %v739_v44 = vld [vmem:[#allocation3 + $0x28] sm:$0xff] }
  0x34   :  { %1301 = vmatprep.subr.bf16.mxu1 %v1300_v32  ;;  %v1312_v42 = vpack.c.bf16 %v737_v40, %v735_v39  ;;  %v741_v45 = vld [vmem:[#allocation3 + $0x38] sm:$0xff]  ;;  %v1314_v46 = vpack.c.bf16 %v736_v43, %v734_v41  ;;  %v738_v48 = vld [vmem:[#allocation3 + $0x20] sm:$0xff]  ;;  %v740_v49 = vld [vmem:[#allocation3 + $0x30] sm:$0xff]  ;;  %p1575_p6 = pnand %p1574_p5, %p1568_p2 }
  0x35   :  { %v1316_v47 = vpack.c.bf16 %v741_v45, %v739_v44  ;;  %v743_v50 = vld [vmem:[#allocation3 + $0x48] sm:$0xff]  ;;  %v745_v51 = vld [vmem:[#allocation3 + $0x58] sm:$0xff]  ;;  %v1318_v52 = vpack.c.bf16 %v740_v49, %v738_v48  ;;  %v742_v54 = vld [vmem:[#allocation3 + $0x40] sm:$0xff] }
  0x36   :  { %1285 = vmatmul.mubr.msk.bf16.gmra.mrb[4].mxu0 %vm314_vm2, %v1508_v13  ;;  %1313 = vmatprep.subr.bf16.mxu0 %v1312_v42  ;;  %v1320_v53 = vpack.c.bf16 %v745_v51, %v743_v50  ;;  %v744_v55 = vld [vmem:[#allocation3 + $0x50] sm:$0xff]  ;;  %v747_v56 = vld [vmem:[#allocation3 + $0x68] sm:$0xff]  ;;  %v749_v57 = vld [vmem:[#allocation3 + $0x78] sm:$0xff] }
  0x37   :  { %1288 = vmatprep.mubr.msk.bf16.mxu0 %vm314_vm2, %v1511_v14  ;;  %1303 = vmatpush1.bf16.msra.mxu1 %v1302_v35  ;;  %v1322_v58 = vpack.c.bf16 %v744_v55, %v742_v54  ;;  %v1324_v59 = vpack.c.bf16 %v749_v57, %v747_v56  ;;  %v746_v60 = vld [vmem:[#allocation3 + $0x60] sm:$0xff]  ;;  %v748_v61 = vld [vmem:[#allocation3 + $0x70] sm:$0xff]  ;;  %v751_v62 = vld [vmem:[#allocation3 + $0x88] sm:$0xff] }
  0x38   :  { %1305 = vmatprep.subr.bf16.mxu1 %v1304_v38  ;;  %1315 = vmatpush1.bf16.msra.mxu0 %v1314_v46  ;;  %v753_v63 = vld [vmem:[#allocation3 + $0x98] sm:$0xff]  ;;  %v1326_v0 = vpack.c.bf16 %v748_v61, %v746_v60  ;;  %v750_v2 = vld [vmem:[#allocation3 + $0x80] sm:$0xff]  ;;  %v752_v3 = vld [vmem:[#allocation3 + $0x90] sm:$0xff] }
  0x39   :  { %1267 = vmatmul.mubr.msk.bf16.gmra.mrb[4].mxu1 %vm145_vm3, %v1510_v15  ;;  %1317 = vmatprep.subr.bf16.mxu0 %v1316_v47  ;;  %v1328_v1 = vpack.c.bf16 %v753_v63, %v751_v62  ;;  %v755_v4 = vld [vmem:[#allocation3 + $0xa8] sm:$0xff]  ;;  %v757_v5 = vld [vmem:[#allocation3 + $0xb8] sm:$0xff]  ;;  %v1330_v6 = vpack.c.bf16 %v752_v3, %v750_v2  ;;  %v754_v8 = vld [vmem:[#allocation3 + $0xa0] sm:$0xff] }
  0x3a   :  { %1270 = vmatprep.mubr.msk.bf16.mxu1 %vm145_vm3, %v1513_v16  ;;  %v1332_v7 = vpack.c.bf16 %v757_v5, %v755_v4  ;;  %v756_v9 = vld [vmem:[#allocation3 + $0xb0] sm:$0xff]  ;;  %v759_v10 = vld [vmem:[#allocation3 + $0xc8] sm:$0xff]  ;;  %v761_v11 = vld [vmem:[#allocation3 + $0xd8] sm:$0xff] }
  0x3b   :  { %v1334_v12 = vpack.c.bf16 %v756_v9, %v754_v8  ;;  %v1336_v13 = vpack.c.bf16 %v761_v11, %v759_v10  ;;  %v758_v14 = vld [vmem:[#allocation3 + $0xc0] sm:$0xff]  ;;  %v760_v15 = vld [vmem:[#allocation3 + $0xd0] sm:$0xff]  ;;  %v763_v16 = vld [vmem:[#allocation3 + $0xe8] sm:$0xff] }
  0x3c   :  { %1319 = vmatpush1.bf16.msra.mxu0 %v1318_v52  ;;  %v769_v24 = vld [vmem:[#allocation3 + $0x118] sm:$0xff]  ;;  %v766_v27 = vld [vmem:[#allocation3 + $0x100] sm:$0xff]  ;;  %v768_v28 = vld [vmem:[#allocation3 + $0x110] sm:$0xff] }
  0x3d   :  { %1321 = vmatprep.subr.bf16.mxu0 %v1320_v53  ;;  %v771_v29 = vld [vmem:[#allocation3 + $0x128] sm:$0xff]  ;;  %v773_v30 = vld [vmem:[#allocation3 + $0x138] sm:$0xff]  ;;  %v1346_v31 = vpack.c.bf16 %v768_v28, %v766_v27  ;;  %v770_v33 = vld [vmem:[#allocation3 + $0x120] sm:$0xff] }
  0x3e   :  { %1289 = vmatmul.mubr.msk.bf16.gmra.mrb[8].mxu0 %vm314_vm2, %v1512_v17  ;;  %v765_v17 = vld [vmem:[#allocation3 + $0xf8] sm:$0xff]  ;;  %v1348_v32 = vpack.c.bf16 %v773_v30, %v771_v29  ;;  %v772_v34 = vld [vmem:[#allocation3 + $0x130] sm:$0xff]  ;;  %v775_v35 = vld [vmem:[#allocation3 + $0x148] sm:$0xff] }
  0x3f   :  { %1292 = vmatprep.mubr.msk.bf16.mxu0 %vm314_vm2, %v1515_v18  ;;  %v1338_v18 = vpack.c.bf16 %v760_v15, %v758_v14  ;;  %v777_v36 = vld [vmem:[#allocation3 + $0x158] sm:$0xff]  ;;  %v1350_v37 = vpack.c.bf16 %v772_v34, %v770_v33  ;;  %v774_v39 = vld [vmem:[#allocation3 + $0x140] sm:$0xff]  ;;  %v776_v40 = vld [vmem:[#allocation3 + $0x150] sm:$0xff] }
  0x40   :  { %1323 = vmatpush1.bf16.msra.mxu0 %v1322_v58  ;;  %v1352_v38 = vpack.c.bf16 %v777_v36, %v775_v35  ;;  %v779_v41 = vld [vmem:[#allocation3 + $0x168] sm:$0xff]  ;;  %v781_v42 = vld [vmem:[#allocation3 + $0x178] sm:$0xff]  ;;  %v1354_v43 = vpack.c.bf16 %v776_v40, %v774_v39  ;;  %v778_v45 = vld [vmem:[#allocation3 + $0x160] sm:$0xff] }
  0x41   :  { %1271 = vmatmul.mubr.msk.bf16.gmra.mrb[8].mxu1 %vm145_vm3, %v1514_v19  ;;  %1325 = vmatprep.subr.bf16.mxu0 %v1324_v59  ;;  %v1340_v19 = vpack.c.bf16 %v765_v17, %v763_v16  ;;  %v1356_v44 = vpack.c.bf16 %v781_v42, %v779_v41  ;;  %v780_v46 = vld [vmem:[#allocation3 + $0x170] sm:$0xff]  ;;  %v783_v47 = vld [vmem:[#allocation3 + $0x188] sm:$0xff]  ;;  %v785_v48 = vld [vmem:[#allocation3 + $0x198] sm:$0xff] }
  0x42   :  { %1274 = vmatprep.mubr.msk.bf16.mxu1 %vm145_vm3, %v1517_v20  ;;  %v762_v20 = vld [vmem:[#allocation3 + $0xe0] sm:$0xff]  ;;  %v1358_v49 = vpack.c.bf16 %v780_v46, %v778_v45  ;;  %v1360_v50 = vpack.c.bf16 %v785_v48, %v783_v47  ;;  %v784_v52 = vld [vmem:[#allocation3 + $0x190] sm:$0xff]  ;;  %v787_v54 = vld [vmem:[#allocation3 + $0x1a8] sm:$0xff] }
  0x43   :  { %v782_v51 = vld [vmem:[#allocation3 + $0x180] sm:$0xff]  ;;  %v789_v55 = vld [vmem:[#allocation3 + $0x1b8] sm:$0xff]  ;;  %v788_v2 = vld [vmem:[#allocation3 + $0x1b0] sm:$0xff] }
  0x44   :  { %1327 = vmatpush1.bf16.msra.mxu0 %v1326_v0  ;;  %v1362_v59 = vpack.c.bf16 %v784_v52, %v782_v51  ;;  %v1817_v61 = vld [vmem:[%s1933_s4] ss:$0 sm:$0xff]  ;;  %v1364_v0 = vpack.c.bf16 %v789_v55, %v787_v54  ;;  %v791_v5 = vld [vmem:[#allocation3 + $0x1c8] sm:$0xff] }
  0x45   :  { %1329 = vmatprep.subr.bf16.mxu0 %v1328_v1  ;;  %v786_v1 = vld [vmem:[#allocation3 + $0x1a0] sm:$0xff] }
  0x46   :  { %1293 = vmatmul.mubr.msk.bf16.gmra.mrb[12].mxu0 %vm314_vm2, %v1516_v21  ;;  %v764_v21 = vld [vmem:[#allocation3 + $0xf0] sm:$0xff] }
  0x47   :  { %v1342_v25 = vpack.c.bf16 %v764_v21, %v762_v20 }
  0x48   :  { %1331 = vmatpush1.bf16.msra.mxu0 %v1330_v6  ;;  %v793_v6 = vld [vmem:[#allocation3 + $0x1d8] sm:$0xff] }
  0x49   :  { %1275 = vmatmul.mubr.msk.bf16.gmra.mrb[12].mxu1 %vm145_vm3, %v1518_v22  ;;  %1333 = vmatprep.subr.bf16.mxu0 %v1332_v7  ;;  %v767_v22 = vld [vmem:[#allocation3 + $0x108] sm:$0xff] }
  0x4a   :  { %652 = vmatprep.mubr.f32.mxu1 %v1626_v23  ;;  %v1344_v26 = vpack.c.bf16 %v769_v24, %v767_v22 }
  0x4c   :  { %1335 = vmatpush1.bf16.msra.mxu0 %v1334_v12  ;;  %v1366_v12 = vpack.c.bf16 %v788_v2, %v786_v1 }
  0x4d   :  { %1337 = vmatprep.subr.bf16.mxu0 %v1336_v13  ;;  %v1368_v13 = vpack.c.bf16 %v793_v6, %v791_v5 }
  0x50   :  { %1339 = vmatpush1.bf16.msra.mxu0 %v1338_v18 }
  0x51   :  { %1341 = vmatprep.subr.bf16.mxu0 %v1340_v19 }
  0x54   :  { %1343 = vmatpush1.bf16.msra.mxu0 %v1342_v25 }
  0x55   :  { %1345 = vmatprep.subr.bf16.mxu0 %v1344_v26 }
  0x58   :  { %1347 = vmatpush1.bf16.msra.mxu0 %v1346_v31 }
  0x59   :  { %1349 = vmatprep.subr.bf16.mxu0 %v1348_v32 }
  0x5c   :  { %1351 = vmatpush1.bf16.msra.mxu0 %v1350_v37 }
  0x5d   :  { %1353 = vmatprep.subr.bf16.mxu0 %v1352_v38 }
  0x60   :  { %1355 = vmatpush1.bf16.msra.mxu0 %v1354_v43 }
  0x61   :  { %1357 = vmatprep.subr.bf16.mxu0 %v1356_v44 }
  0x64   :  { %1359 = vmatpush1.bf16.msra.mxu0 %v1358_v49 }
  0x65   :  { %1361 = vmatprep.subr.bf16.mxu0 %v1360_v50 }
  0x68   :  { %1363 = vmatpush1.bf16.msra.mxu0 %v1362_v59 }
  0x69   :  { %1365 = vmatprep.subr.bf16.mxu0 %v1364_v0 }
  0x6c   :  { %1367 = vmatpush1.bf16.msra.mxu0 %v1366_v12 }
  0x6d   :  { %1369 = vmatprep.subr.bf16.mxu0 %v1368_v13 }
 0x101   :  { %v1282_v53 = vpop.f32.mrb[0].mxu0 }
 0x102   :  { %v376_v56 = vpop.f32.mrb[1].mxu0 }
 0x103   :  { %v1283_v58 = vpop.f32.mrb[2].mxu0 }
 0x104   :  { %v1264_v57 = vpop.f32.mrb[0].mxu1  ;;  %v379_v63 = vpop.f32.mrb[3].mxu0 }
 0x105   :  { %v385_v60 = vadd.f32 %v1282_v53, %v1264_v57  ;;  %v211_v62 = vpop.f32.mrb[1].mxu1 }
 0x106   :  { %v377_v3 = vadd.f32 %v376_v56, %v211_v62  ;;  %v1265_v4 = vpop.f32.mrb[2].mxu1 }
 0x107   :  { %v388_v7 = vadd.f32 %v1283_v58, %v1265_v4  ;;  %v214_v8 = vpop.f32.mrb[3].mxu1  ;;  %v446_v9 = vadd.f32 %v1817_v61, %v385_v60 }
 0x108   :  { %v444_v10 = vadd.f32 %v1817_v61, %v377_v3  ;;  %v380_v11 = vadd.f32 %v379_v63, %v214_v8 }
 0x109   :  { %v447_v15 = vadd.f32 %v1817_v61, %v388_v7  ;;  %v1286_v17 = vpop.f32.mrb[4].mxu0  ;;  %v462_v19 = vmax.f32 %v446_v9, 0.0 }
 0x10a   :  { %v460_v14 = vmax.f32 %v444_v10, 0.0  ;;  %v445_v16 = vadd.f32 %v1817_v61, %v380_v11  ;;  %v392_v18 = vpop.f32.mrb[5].mxu0 }
 0x10b   :  { %v1287_v22 = vpop.f32.mrb[6].mxu0  ;;  %v463_v28 = vmax.f32 %v447_v15, 0.0  ;;  %v481_v35 = vsel %vm477_vm5, %v462_v19, 0.0 }
 0x10c   :  { %v461_v20 = vmax.f32 %v445_v16, 0.0  ;;  %v1268_v21 = vpop.f32.mrb[4].mxu1  ;;  %v395_v26 = vpop.f32.mrb[7].mxu0  ;;  %v478_v27 = vsel %vm477_vm5, %v460_v14, 0.0 }
 0x10d   :  { %v401_v24 = vadd.f32 %v1286_v17, %v1268_v21  ;;  %v227_v25 = vpop.f32.mrb[5].mxu1  ;;  %v483_v40 = vsel %vm477_vm5, %v463_v28, 0.0 }
 0x10e   :  { %v479_v29 = vsel %vm477_vm5, %v461_v20, 0.0  ;;  %v393_v30 = vadd.f32 %v392_v18, %v227_v25  ;;  %v1269_v31 = vpop.f32.mrb[6].mxu1 }
 0x10f   :  { %v480_v32 = vadd.f32 %v479_v29, %v478_v27  ;;  %v404_v33 = vadd.f32 %v1287_v22, %v1269_v31  ;;  %v230_v34 = vpop.f32.mrb[7].mxu1  ;;  %v450_v36 = vadd.f32 %v1817_v61, %v401_v24 }
 0x110   :  { %v448_v37 = vadd.f32 %v1817_v61, %v393_v30  ;;  %v396_v38 = vadd.f32 %v395_v26, %v230_v34 }
 0x111   :  { %v482_v39 = vadd.f32 %v481_v35, %v480_v32  ;;  %v451_v42 = vadd.f32 %v1817_v61, %v404_v33  ;;  %v1290_v44 = vpop.f32.mrb[8].mxu0  ;;  %v466_v47 = vmax.f32 %v450_v36, 0.0 }
 0x112   :  { %v464_v41 = vmax.f32 %v448_v37, 0.0  ;;  %v449_v43 = vadd.f32 %v1817_v61, %v396_v38  ;;  %v408_v46 = vpop.f32.mrb[9].mxu0 }
 0x113   :  { %v484_v45 = vadd.f32 %v483_v40, %v482_v39  ;;  %v1291_v51 = vpop.f32.mrb[10].mxu0  ;;  %v467_v56 = vmax.f32 %v451_v42, 0.0  ;;  %v489_v0 = vsel %vm477_vm5, %v466_v47, 0.0 }
 0x114   :  { %v485_v48 = vsel %vm477_vm5, %v464_v41, 0.0  ;;  %v465_v49 = vmax.f32 %v449_v43, 0.0  ;;  %v1272_v50 = vpop.f32.mrb[8].mxu1  ;;  %v411_v55 = vpop.f32.mrb[11].mxu0 }
 0x115   :  { %v486_v52 = vadd.f32 %v485_v48, %v484_v45  ;;  %v417_v53 = vadd.f32 %v1290_v44, %v1272_v50  ;;  %v243_v54 = vpop.f32.mrb[9].mxu1  ;;  %v491_v5 = vsel %vm477_vm5, %v467_v56, 0.0 }
 0x116   :  { %v487_v57 = vsel %vm477_vm5, %v465_v49, 0.0  ;;  %v409_v58 = vadd.f32 %v408_v46, %v243_v54  ;;  %v1273_v59 = vpop.f32.mrb[10].mxu1 }
 0x117   :  { %v488_v60 = vadd.f32 %v487_v57, %v486_v52  ;;  %v420_v62 = vadd.f32 %v1291_v51, %v1273_v59  ;;  %v246_v63 = vpop.f32.mrb[11].mxu1  ;;  %v454_v1 = vadd.f32 %v1817_v61, %v417_v53 }
 0x118   :  { %v452_v2 = vadd.f32 %v1817_v61, %v409_v58  ;;  %v412_v3 = vadd.f32 %v411_v55, %v246_v63 }
 0x119   :  { %v490_v4 = vadd.f32 %v489_v0, %v488_v60  ;;  %v455_v7 = vadd.f32 %v1817_v61, %v420_v62  ;;  %v1294_v9 = vpop.f32.mrb[12].mxu0  ;;  %v470_v12 = vmax.f32 %v454_v1, 0.0  ;;  %v476_v60 = vld [vmem:[#allocation2] sm:$0x3] }
 0x11a   :  { %v468_v6 = vmax.f32 %v452_v2, 0.0  ;;  %v453_v8 = vadd.f32 %v1817_v61, %v412_v3  ;;  %v424_v11 = vpop.f32.mrb[13].mxu0  ;;  %v1201_v1 = vld [vmem:[%s1933_s4 + $0x1] ss:$0 sm:$0xff]  ;;  %v1202_v3 = vld [vmem:[%s1933_s4 + $0x2] ss:$0 sm:$0xff] }
 0x11b   :  { %v492_v10 = vadd.f32 %v491_v5, %v490_v4  ;;  %v1295_v15 = vpop.f32.mrb[14].mxu0  ;;  %v471_v20 = vmax.f32 %v455_v7, 0.0  ;;  %v502_v28 = vsel %vm477_vm5, %v470_v12, 0.0  ;;  %v549_v5 = vld [vmem:[%s1934_s5 + $0x10] sm:$0xff]  ;;  %v558_v7 = vld [vmem:[%s1934_s5 + $0x58] sm:$0xff] }
 0x11c   :  { %v469_v13 = vmax.f32 %v453_v8, 0.0  ;;  %v1276_v14 = vpop.f32.mrb[12].mxu1  ;;  %v427_v18 = vpop.f32.mrb[15].mxu0  ;;  %v499_v19 = vsel %vm477_vm5, %v468_v6, 0.0  ;;  %v553_v6 = vld [vmem:[%s1934_s5 + $0x30] sm:$0xff]  ;;  %v562_v8 = vld [vmem:[%s1934_s5 + $0x78] sm:$0xff] }
 0x11d   :  { %v433_v16 = vadd.f32 %v1294_v9, %v1276_v14  ;;  %v259_v17 = vpop.f32.mrb[13].mxu1  ;;  %v504_v33 = vsel %vm477_vm5, %v471_v20, 0.0  ;;  %v493_v37 = vrot.slane %v492_v10, 4  ;;  %v1308_v12 = vpack.c.bf16 %v562_v8, %v558_v7  ;;  %v561_v14 = vld [vmem:[%s1934_s5 + $0x70] sm:$0xff] }
 0x11e   :  { %v500_v21 = vsel %vm477_vm5, %v469_v13, 0.0  ;;  %v425_v22 = vadd.f32 %v424_v11, %v259_v17  ;;  %v1277_v24 = vpop.f32.mrb[14].mxu1  ;;  %v557_v13 = vld [vmem:[%s1934_s5 + $0x50] sm:$0xff] }
 0x11f   :  { %v501_v25 = vadd.f32 %v500_v21, %v499_v19  ;;  %v436_v26 = vadd.f32 %v1295_v15, %v1277_v24  ;;  %v262_v27 = vpop.f32.mrb[15].mxu1  ;;  %v458_v29 = vadd.f32 %v1817_v61, %v433_v16  ;;  %v494_v45 = vadd.f32 %v493_v37, %v492_v10  ;;  %v799_v15 = vld [vmem:[#allocation3 + $0x208] sm:$0xff]  ;;  %v801_v16 = vld [vmem:[#allocation3 + $0x218] sm:$0xff]  ;;  %v798_v19 = vld [vmem:[#allocation3 + $0x200] sm:$0xff] }
 0x120   :  { %v456_v30 = vadd.f32 %v1817_v61, %v425_v22  ;;  %v428_v31 = vadd.f32 %v427_v18, %v262_v27  ;;  %v1306_v10 = vpack.c.bf16 %v553_v6, %v549_v5  ;;  %v1310_v17 = vpack.c.bf16 %v561_v14, %v557_v13  ;;  %v800_v20 = vld [vmem:[#allocation3 + $0x210] sm:$0xff]  ;;  %v803_v21 = vld [vmem:[#allocation3 + $0x228] sm:$0xff]  ;;  %v805_v22 = vld [vmem:[#allocation3 + $0x238] sm:$0xff] }
 0x121   :  { %v503_v32 = vadd.f32 %v502_v28, %v501_v25  ;;  %v459_v35 = vadd.f32 %v1817_v61, %v436_v26  ;;  %v474_v39 = vmax.f32 %v458_v29, 0.0  ;;  %v495_v50 = vrot.slane %v494_v45, 2  ;;  %v802_v26 = vld [vmem:[#allocation3 + $0x220] sm:$0xff]  ;;  %v804_v27 = vld [vmem:[#allocation3 + $0x230] sm:$0xff]  ;;  %v807_v28 = vld [vmem:[#allocation3 + $0x248] sm:$0xff] }
 0x122   :  { %v472_v34 = vmax.f32 %v456_v30, 0.0  ;;  %v457_v36 = vadd.f32 %v1817_v61, %v428_v31  ;;  %v1376_v18 = vpack.c.bf16 %v801_v16, %v799_v15  ;;  %v1378_v24 = vpack.c.bf16 %v800_v20, %v798_v19  ;;  %v809_v29 = vld [vmem:[#allocation3 + $0x258] sm:$0xff]  ;;  %v806_v31 = vld [vmem:[#allocation3 + $0x240] sm:$0xff]  ;;  %v835_v5 = vld [vmem:[#allocation3 + $0x328] sm:$0xff] }
 0x123   :  { %v505_v38 = vadd.f32 %v504_v33, %v503_v32  ;;  %v475_v43 = vmax.f32 %v459_v35, 0.0  ;;  %v510_v47 = vsel %vm477_vm5, %v474_v39, 0.0  ;;  %v496_v52 = vadd.f32 %v495_v50, %v494_v45  ;;  %v808_v32 = vld [vmem:[#allocation3 + $0x250] sm:$0xff]  ;;  %v811_v33 = vld [vmem:[#allocation3 + $0x268] sm:$0xff]  ;;  %v810_v37 = vld [vmem:[#allocation3 + $0x260] sm:$0xff] }
 0x124   :  { %v506_v40 = vsel %vm477_vm5, %v472_v34, 0.0  ;;  %v473_v41 = vmax.f32 %v457_v36, 0.0  ;;  %v1380_v25 = vpack.c.bf16 %v805_v22, %v803_v21  ;;  %v1382_v30 = vpack.c.bf16 %v804_v27, %v802_v26  ;;  %v813_v34 = vld [vmem:[#allocation3 + $0x278] sm:$0xff]  ;;  %v815_v39 = vld [vmem:[#allocation3 + $0x288] sm:$0xff]  ;;  %v820_v50 = vld [vmem:[#allocation3 + $0x2b0] sm:$0xff] }
 0x125   :  { %v507_v42 = vadd.f32 %v506_v40, %v505_v38  ;;  %v512_v49 = vsel %vm477_vm5, %v475_v43, 0.0  ;;  %v497_v55 = vrot.slane %v496_v52, 1  ;;  %v1386_v35 = vpack.c.bf16 %v808_v32, %v806_v31  ;;  %v812_v38 = vld [vmem:[#allocation3 + $0x270] sm:$0xff]  ;;  %v817_v40 = vld [vmem:[#allocation3 + $0x298] sm:$0xff]  ;;  %v814_v43 = vld [vmem:[#allocation3 + $0x280] sm:$0xff] }
 0x126   :  { %v508_v44 = vsel %vm477_vm5, %v473_v41, 0.0  ;;  %v1388_v36 = vpack.c.bf16 %v813_v34, %v811_v33  ;;  %v1390_v41 = vpack.c.bf16 %v812_v38, %v810_v37  ;;  %v819_v45 = vld [vmem:[#allocation3 + $0x2a8] sm:$0xff]  ;;  %v837_v6 = vld [vmem:[#allocation3 + $0x338] sm:$0xff]  ;;  %v838_v15 = vld [vmem:[#allocation3 + $0x340] sm:$0xff] }
 0x127   :  { %v509_v46 = vadd.f32 %v508_v44, %v507_v42  ;;  %v498_v58 = vadd.f32 %v497_v55, %v496_v52  ;;  %v1392_v42 = vpack.c.bf16 %v817_v40, %v815_v39  ;;  %v816_v44 = vld [vmem:[#allocation3 + $0x290] sm:$0xff]  ;;  %v1412_v8 = vpack.c.bf16 %v837_v6, %v835_v5  ;;  %v842_v21 = vld [vmem:[#allocation3 + $0x360] sm:$0xff]  ;;  %v851_v33 = vld [vmem:[#allocation3 + $0x3a8] sm:$0xff] }
 0x128   :  { %v824_v55 = vld [vmem:[#allocation3 + $0x2d0] sm:$0xff]  ;;  %v853_v34 = vld [vmem:[#allocation3 + $0x3b8] sm:$0xff]  ;;  %v850_v38 = vld [vmem:[#allocation3 + $0x3a0] sm:$0xff] }
 0x129   :  { %v511_v48 = vadd.f32 %v510_v47, %v509_v46  ;;  %v821_v46 = vld [vmem:[#allocation3 + $0x2b8] sm:$0xff]  ;;  %v1394_v47 = vpack.c.bf16 %v816_v44, %v814_v43  ;;  %v840_v16 = vld [vmem:[#allocation3 + $0x350] sm:$0xff] }
 0x12a   :  { %v1418_v19 = vpack.c.bf16 %v840_v16, %v838_v15  ;;  %v844_v22 = vld [vmem:[#allocation3 + $0x370] sm:$0xff]  ;;  %v797_v37 = vld [vmem:[#allocation3 + $0x1f8] sm:$0xff] }
 0x12b   :  { %v513_v51 = vadd.f32 %v512_v49, %v511_v48  ;;  %v1396_v48 = vpack.c.bf16 %v821_v46, %v819_v45  ;;  %v818_v49 = vld [vmem:[#allocation3 + $0x2a0] sm:$0xff]  ;;  %v1422_v26 = vpack.c.bf16 %v844_v22, %v842_v21  ;;  %v792_v31 = vld [vmem:[#allocation3 + $0x1d0] sm:$0xff]  ;;  %v855_v45 = vld [vmem:[#allocation3 + $0x3c8] sm:$0xff] }
 0x12c   :  { %v1398_v52 = vpack.c.bf16 %v820_v50, %v818_v49  ;;  %v852_v40 = vld [vmem:[#allocation3 + $0x3b0] sm:$0xff]  ;;  %v857_v46 = vld [vmem:[#allocation3 + $0x3d8] sm:$0xff]  ;;  %v1039_v21 = vld [vmem:[#allocation6 + $0xa0] sm:$0xff] }
 0x12d   :  { %v514_v61 = vrot.slane %v513_v51, 4  ;;  %v1430_v43 = vpack.c.bf16 %v852_v40, %v850_v38  ;;  %v856_v49 = vld [vmem:[#allocation3 + $0x3d0] sm:$0xff]  ;;  %v1040_v22 = vld [vmem:[#allocation6 + $0xa8] sm:$0xff]  ;;  %v1026_v38 = vld [vmem:[#allocation6 + $0x38] sm:$0xff] }
 0x12e   :  { %v1044_v40 = vld [vmem:[#allocation6 + $0xc8] sm:$0xff] }
 0x12f   :  { %v515_v53 = vadd.f32 %v514_v61, %v513_v51  ;;  %v823_v51 = vld [vmem:[#allocation3 + $0x2c8] sm:$0xff]  ;;  %v825_v61 = vld [vmem:[#allocation3 + $0x2d8] sm:$0xff] }
 0x131   :  { %v516_v54 = vrot.slane %v515_v53, 2 }
 0x133   :  { %v517_v56 = vadd.f32 %v516_v54, %v515_v53  ;;  %v1400_v53 = vpack.c.bf16 %v825_v61, %v823_v51  ;;  %v822_v54 = vld [vmem:[#allocation3 + $0x2c0] sm:$0xff]  ;;  %v859_v51 = vld [vmem:[#allocation3 + $0x3e8] sm:$0xff]  ;;  %v861_v61 = vld [vmem:[#allocation3 + $0x3f8] sm:$0xff] }
 0x135   :  { %v518_v57 = vrot.slane %v517_v56, 1 }
 0x137   :  { %v519_v59 = vadd.f32 %v518_v57, %v517_v56  ;;  %v827_v56 = vld [vmem:[#allocation3 + $0x2e8] sm:$0xff]  ;;  %v829_v57 = vld [vmem:[#allocation3 + $0x2f8] sm:$0xff] }
 0x139   :  { %v523_v62 = vsel %vm522_vm6, %v519_v59, %v498_v58  ;;  %v1402_v58 = vpack.c.bf16 %v824_v55, %v822_v54  ;;  %v1404_v59 = vpack.c.bf16 %v829_v57, %v827_v56  ;;  %v860_v54 = vld [vmem:[#allocation3 + $0x3f0] sm:$0xff]  ;;  %v1035_v56 = vld [vmem:[#allocation6 + $0x80] sm:$0xff]  ;;  %v1036_v57 = vld [vmem:[#allocation6 + $0x88] sm:$0xff] }
 0x13a   :  { %v525_v63 = vadd.f32 %v523_v62, %v476_v60  ;;  %v826_v60 = vld [vmem:[#allocation3 + $0x2e0] sm:$0xff]  ;;  %v828_v62 = vld [vmem:[#allocation3 + $0x2f0] sm:$0xff] }
 0x13c   :  { %527 = vst.msk [vmem:[#allocation2] sm:$0x3] %vm69_vm4, %v525_v63  ;;  %v831_v63 = vld [vmem:[#allocation3 + $0x308] sm:$0xff] }
 0x143   :  { %v531_v0 = vld [vmem:[#allocation2] sm:$0x3] }
 0x144   :  { %v532_v2 = vmul.f32 0.015625, %v531_v0  ;;  %v833_v0 = vld [vmem:[#allocation3 + $0x318] sm:$0xff] }
 0x146   :  { %v538_v4 = vmul.f32 %v1201_v1, %v532_v2  ;;  %v1406_v1 = vpack.c.bf16 %v828_v62, %v826_v60  ;;  %v1408_v2 = vpack.c.bf16 %v833_v0, %v831_v63  ;;  %v563_v63 = vld [vmem:[%s1937_s8] ss:$4 sm:$0xf] }
 0x148   :  { %v544_v9 = vadd.f32 %v1202_v3, %v538_v4  ;;  %v830_v3 = vld [vmem:[#allocation3 + $0x300] sm:$0xff]  ;;  %v832_v4 = vld [vmem:[#allocation3 + $0x310] sm:$0xff] }
 0x149   :  { %v1410_v7 = vpack.c.bf16 %v832_v4, %v830_v3 }
 0x14a   :  { %v545_v11 = vmax.f32 %v544_v9, 0.0  ;;  %v834_v9 = vld [vmem:[#allocation3 + $0x320] sm:$0xff] }
 0x14c   :  { %1203 = vmatmul.mubr.msk.f32.vlgmr.msra.gmra.mrb[16].mxu1 %vm477_vm5, %v545_v11  ;;  %546 = vst.msk [vmem:[#allocation9] sm:$0x3] %vm69_vm4, %v545_v11 }
 0x14d   :  { %1307 = vmatpush1.bf16.msra.mxu1 %v1306_v10  ;;  %723 = vmatprep.mubr.f32.mxu1 %v1626_v23  ;;  %v1384_v23 = vpack.c.bf16 %v809_v29, %v807_v28  ;;  %v836_v10 = vld [vmem:[#allocation3 + $0x330] sm:$0xff]  ;;  %v846_v28 = vld [vmem:[#allocation3 + $0x380] sm:$0xff] }
 0x14e   :  { %1309 = vmatprep.subr.bf16.mxu1 %v1308_v12  ;;  %v841_v12 = vld [vmem:[#allocation3 + $0x358] sm:$0xff]  ;;  %v1414_v13 = vpack.c.bf16 %v836_v10, %v834_v9  ;;  %v848_v29 = vld [vmem:[#allocation3 + $0x390] sm:$0xff] }
 0x151   :  { %1311 = vmatpush1.bf16.msra.mxu1 %v1310_v17  ;;  %v843_v17 = vld [vmem:[#allocation3 + $0x368] sm:$0xff] }
 0x152   :  { %1377 = vmatprep.subr.bf16.mxu1 %v1376_v18  ;;  %v845_v18 = vld [vmem:[#allocation3 + $0x378] sm:$0xff] }
 0x153   :  { %v1420_v20 = vpack.c.bf16 %v845_v18, %v843_v17  ;;  %v1021_v18 = vld [vmem:[#allocation6 + $0x10] sm:$0xff] }
 0x154   :  { %1204 = vmatmul.mubr.msk.f32.vlgmr.msra.gmra.mrb[18].mxu1 %vm477_vm5, %v545_v11  ;;  %v839_v11 = vld [vmem:[#allocation3 + $0x348] sm:$0xff] }
 0x155   :  { %1379 = vmatpush1.bf16.msra.mxu1 %v1378_v24  ;;  %v1416_v14 = vpack.c.bf16 %v841_v12, %v839_v11  ;;  %v847_v24 = vld [vmem:[#allocation3 + $0x388] sm:$0xff]  ;;  %v1037_v11 = vld [vmem:[#allocation6 + $0x90] sm:$0xff]  ;;  %v1038_v12 = vld [vmem:[#allocation6 + $0x98] sm:$0xff] }
 0x156   :  { %1381 = vmatprep.subr.bf16.mxu1 %v1380_v25  ;;  %v849_v25 = vld [vmem:[#allocation3 + $0x398] sm:$0xff]  ;;  %v1444_v17 = vpack.c.bf16 %v1038_v12, %v1037_v11 }
 0x157   :  { %v1424_v27 = vpack.c.bf16 %v849_v25, %v847_v24 }
 0x159   :  { %1383 = vmatpush1.bf16.msra.mxu1 %v1382_v30  ;;  %v1426_v30 = vpack.c.bf16 %v848_v29, %v846_v28  ;;  %v1448_v28 = vpack.c.bf16 %v1040_v22, %v1039_v21  ;;  %v1023_v29 = vld [vmem:[#allocation6 + $0x20] sm:$0xff] }
 0x15a   :  { %1385 = vmatprep.subr.bf16.mxu1 %v1384_v23  ;;  %v790_v23 = vld [vmem:[#allocation3 + $0x1c0] sm:$0xff] }
 0x15b   :  { %v1370_v32 = vpack.c.bf16 %v792_v31, %v790_v23  ;;  %v1041_v31 = vld [vmem:[#allocation6 + $0xb0] sm:$0xff] }
 0x15d   :  { %1387 = vmatpush1.bf16.msra.mxu1 %v1386_v35  ;;  %1371 = vmatpush1.bf16.msra.mxu0 %v1370_v32  ;;  %v1428_v35 = vpack.c.bf16 %v853_v34, %v851_v33  ;;  %v1042_v32 = vld [vmem:[#allocation6 + $0xb8] sm:$0xff] }
 0x15e   :  { %1389 = vmatprep.subr.bf16.mxu1 %v1388_v36  ;;  %v795_v36 = vld [vmem:[#allocation3 + $0x1e8] sm:$0xff] }
 0x15f   :  { %v1372_v39 = vpack.c.bf16 %v797_v37, %v795_v36  ;;  %v1452_v36 = vpack.c.bf16 %v1042_v32, %v1041_v31  ;;  %v1025_v37 = vld [vmem:[#allocation6 + $0x30] sm:$0xff] }
 0x161   :  { %1391 = vmatpush1.bf16.msra.mxu1 %v1390_v41  ;;  %v794_v41 = vld [vmem:[#allocation3 + $0x1e0] sm:$0xff]  ;;  %1373 = vmatprep.subr.bf16.mxu0 %v1372_v39 }
 0x162   :  { %1393 = vmatprep.subr.bf16.mxu1 %v1392_v42  ;;  %v796_v42 = vld [vmem:[#allocation3 + $0x1f0] sm:$0xff]  ;;  %v1043_v39 = vld [vmem:[#allocation6 + $0xc0] sm:$0xff] }
 0x163   :  { %v1374_v44 = vpack.c.bf16 %v796_v42, %v794_v41  ;;  %v1454_v41 = vpack.c.bf16 %v1026_v38, %v1025_v37  ;;  %v1456_v42 = vpack.c.bf16 %v1044_v40, %v1043_v39 }
 0x165   :  { %1395 = vmatpush1.bf16.msra.mxu1 %v1394_v47  ;;  %1375 = vmatpush1.bf16.msra.mxu0 %v1374_v44  ;;  %v1432_v47 = vpack.c.bf16 %v857_v46, %v855_v45  ;;  %v1028_v44 = vld [vmem:[#allocation6 + $0x48] sm:$0xff]  ;;  %v1045_v46 = vld [vmem:[#allocation6 + $0xd0] sm:$0xff] }
 0x166   :  { %1397 = vmatprep.subr.bf16.mxu1 %v1396_v48  ;;  %v854_v48 = vld [vmem:[#allocation3 + $0x3c0] sm:$0xff] }
 0x167   :  { %v1434_v50 = vpack.c.bf16 %v856_v49, %v854_v48  ;;  %v1029_v49 = vld [vmem:[#allocation6 + $0x50] sm:$0xff] }
 0x169   :  { %1399 = vmatpush1.bf16.msra.mxu1 %v1398_v52  ;;  %v1436_v52 = vpack.c.bf16 %v861_v61, %v859_v51  ;;  %v1047_v61 = vld [vmem:[#allocation6 + $0xe0] sm:$0xff] }
 0x16a   :  { %1401 = vmatprep.subr.bf16.mxu1 %v1400_v53  ;;  %v858_v53 = vld [vmem:[#allocation3 + $0x3e0] sm:$0xff] }
 0x16b   :  { %v1438_v55 = vpack.c.bf16 %v860_v54, %v858_v53  ;;  %v1031_v54 = vld [vmem:[#allocation6 + $0x60] sm:$0xff] }
 0x16d   :  { %1403 = vmatpush1.bf16.msra.mxu1 %v1402_v58  ;;  %v1440_v58 = vpack.c.bf16 %v1036_v57, %v1035_v56  ;;  %v1049_v57 = vld [vmem:[#allocation6 + $0xf0] sm:$0xff] }
 0x16e   :  { %1405 = vmatprep.subr.bf16.mxu1 %v1404_v59  ;;  %v565_v59 = vlaneseq }
 0x16f   :  { %1441 = vmatprep.subr.bf16.mxu0 %v1440_v58  ;;  %v1050_v58 = vld [vmem:[#allocation6 + $0xf8] sm:$0xff] }
 0x170   :  { %v1880_v60 = vshrl.u32 %v565_v59, 7  ;;  %v1468_v59 = vpack.c.bf16 %v1050_v58, %v1049_v57 }
 0x171   :  { %1407 = vmatpush1.bf16.msra.mxu1 %v1406_v1 }
 0x172   :  { %1409 = vmatprep.subr.bf16.mxu1 %v1408_v2  ;;  %v567_v62 = vsub.s32 0, %v1880_v60  ;;  %v571_v0 = vsub.s32 1, %v1880_v60  ;;  %v575_v6 = vsub.s32 2, %v1880_v60  ;;  %v579_v10 = vsub.s32 3, %v1880_v60 }
 0x174   :  { %v568_v1 = vrot.slane %v563_v63, %v567_v62  ;;  %v572_v2 = vrot.slane %v563_v63, %v571_v0  ;;  %v576_v16 = vrot.slane %v563_v63, %v575_v6 }
 0x175   :  { %1411 = vmatpush1.bf16.msra.mxu1 %v1410_v7  ;;  %v1019_v7 = vld [vmem:[#allocation6] sm:$0xff] }
 0x176   :  { %1413 = vmatprep.subr.bf16.mxu1 %v1412_v8  ;;  %v1020_v8 = vld [vmem:[#allocation6 + $0x8] sm:$0xff] }
 0x179   :  { %1415 = vmatpush1.bf16.msra.mxu1 %v1414_v13 }
 0x17a   :  { %1417 = vmatprep.subr.bf16.mxu1 %v1416_v14  ;;  %v1442_v14 = vpack.c.bf16 %v1020_v8, %v1019_v7 }
 0x17d   :  { %1419 = vmatpush1.bf16.msra.mxu1 %v1418_v19  ;;  %v1022_v19 = vld [vmem:[#allocation6 + $0x18] sm:$0xff] }
 0x17e   :  { %1421 = vmatprep.subr.bf16.mxu1 %v1420_v20  ;;  %v580_v20 = vrot.slane %v563_v63, %v579_v10  ;;  %v1446_v25 = vpack.c.bf16 %v1022_v19, %v1021_v18  ;;  %v1033_v63 = vld [vmem:[#allocation6 + $0x70] sm:$0xff]  ;;  %v1206_v18 = vld [vmem:[%s1937_s8 + $0x2] ss:$0 sm:$0xff] }
 0x181   :  { %1423 = vmatpush1.bf16.msra.mxu1 %v1422_v26 }
 0x182   :  { %1425 = vmatprep.subr.bf16.mxu1 %v1424_v27 }
 0x185   :  { %1427 = vmatpush1.bf16.msra.mxu1 %v1426_v30  ;;  %v1024_v30 = vld [vmem:[#allocation6 + $0x28] sm:$0xff] }
 0x186   :  { %1429 = vmatprep.subr.bf16.mxu1 %v1428_v35  ;;  %v1450_v34 = vpack.c.bf16 %v1024_v30, %v1023_v29 }
 0x189   :  { %1431 = vmatpush1.bf16.msra.mxu1 %v1430_v43  ;;  %v1027_v43 = vld [vmem:[#allocation6 + $0x40] sm:$0xff] }
 0x18a   :  { %1433 = vmatprep.subr.bf16.mxu1 %v1432_v47  ;;  %v1458_v45 = vpack.c.bf16 %v1028_v44, %v1027_v43  ;;  %v1046_v47 = vld [vmem:[#allocation6 + $0xd8] sm:$0xff] }
 0x18b   :  { %v1460_v48 = vpack.c.bf16 %v1046_v47, %v1045_v46 }
 0x18d   :  { %1435 = vmatpush1.bf16.msra.mxu1 %v1434_v50  ;;  %v1030_v50 = vld [vmem:[#allocation6 + $0x58] sm:$0xff] }
 0x18e   :  { %1437 = vmatprep.subr.bf16.mxu1 %v1436_v52  ;;  %v1462_v51 = vpack.c.bf16 %v1030_v50, %v1029_v49  ;;  %v1048_v52 = vld [vmem:[#allocation6 + $0xe8] sm:$0xff] }
 0x18f   :  { %v1464_v53 = vpack.c.bf16 %v1048_v52, %v1047_v61 }
 0x191   :  { %1439 = vmatpush1.bf16.msra.mxu1 %v1438_v55  ;;  %v1032_v55 = vld [vmem:[#allocation6 + $0x68] sm:$0xff] }
 0x192   :  { %v1466_v56 = vpack.c.bf16 %v1032_v55, %v1031_v54 }
 0x21f   :  { %v654_v3 = vpop.f32.mrb[16].mxu1 }
 0x220   :  { %v655_v4 = vadd.f32 %v654_v3, %v568_v1  ;;  %v656_v5 = vpop.f32.mrb[17].mxu1  ;;  %v1034_v1 = vld [vmem:[#allocation6 + $0x78] sm:$0xff] }
 0x221   :  { %v657_v9 = vadd.f32 %v656_v5, %v572_v2  ;;  %v1470_v2 = vpack.c.bf16 %v1034_v1, %v1033_v63  ;;  %v1205_v3 = vld [vmem:[%s1937_s8 + $0x1] ss:$4 sm:$0x3] }
 0x222   :  { %v730_v15 = vmax.f32 %v655_v4, 0.0  ;;  %v868_v6 = vrot.slane %v1205_v3, %v567_v62  ;;  %v872_v7 = vrot.slane %v1205_v3, %v571_v0 }
 0x223   :  { %v731_v13 = vmax.f32 %v657_v9, 0.0 }
 0x225   :  { %939 = vmatprep.mubr.f32.mxu0 %v731_v13 }
 0x226   :  { %940 = vmatmul.mubr.f32.vlgmr.msra.gmra.mrb[16].mxu0 %v730_v15 }
 0x227   :  { %v725_v24 = vpop.f32.mrb[18].mxu1  ;;  %1443 = vmatpush3.bf16.msra.mxu0 %v1442_v14 }
 0x228   :  { %v726_v26 = vadd.f32 %v725_v24, %v576_v16  ;;  %v727_v27 = vpop.f32.mrb[19].mxu1  ;;  %1445 = vmatprep.subr.bf16.mxu0 %v1444_v17 }
 0x229   :  { %v728_v23 = vadd.f32 %v727_v27, %v580_v20 }
 0x22a   :  { %v732_v35 = vmax.f32 %v726_v26, 0.0 }
 0x22b   :  { %v733_v33 = vmax.f32 %v728_v23, 0.0  ;;  %1447 = vmatpush3.bf16.msra.mxu0 %v1446_v25 }
 0x22c   :  { %1449 = vmatprep.subr.bf16.mxu0 %v1448_v28 }
 0x22d   :  { %1010 = vmatprep.mubr.f32.mxu1 %v733_v33 }
 0x22e   :  { %1011 = vmatmul.mubr.f32.vlgmr.msra.gmra.mrb[20].mxu1 %v732_v35 }
 0x22f   :  { %1451 = vmatpush3.bf16.msra.mxu0 %v1450_v34 }
 0x230   :  { %1453 = vmatprep.subr.bf16.mxu0 %v1452_v36 }
 0x233   :  { %1455 = vmatpush3.bf16.msra.mxu0 %v1454_v41 }
 0x234   :  { %1457 = vmatprep.subr.bf16.mxu0 %v1456_v42 }
 0x237   :  { %1459 = vmatpush3.bf16.msra.mxu0 %v1458_v45 }
 0x238   :  { %1461 = vmatprep.subr.bf16.mxu0 %v1460_v48 }
 0x23b   :  { %1463 = vmatpush3.bf16.msra.mxu0 %v1462_v51 }
 0x23c   :  { %1465 = vmatprep.subr.bf16.mxu0 %v1464_v53 }
 0x23f   :  { %1467 = vmatpush3.bf16.msra.mxu0 %v1466_v56 }
 0x240   :  { %1469 = vmatprep.subr.bf16.mxu0 %v1468_v59 }
 0x243   :  { %1471 = vmatpush3.bf16.msra.mxu0 %v1470_v2 }
 0x2f9   :  { %v941_v4 = vpop.f32.mrb[16].mxu0 }
 0x2fa   :  { %v943_v5 = vpop.f32.mrb[17].mxu0  ;;  %v942_v8 = vadd.f32 %v941_v4, %v868_v6 }
 0x2fb   :  { %v944_v9 = vadd.f32 %v943_v5, %v872_v7 }
 0x301   :  { %v1012_v10 = vpop.f32.mrb[20].mxu1 }
 0x302   :  { %v1013_v11 = vadd.f32 %v1012_v10, %v942_v8  ;;  %v1014_v12 = vpop.f32.mrb[21].mxu1 }
 0x303   :  { %v1015_v13 = vadd.f32 %v1014_v12, %v944_v9 }
 0x304   :  { %v1017_v15 = vmax.f32 %v1013_v11, 0.0 }
 0x305   :  { %v1018_v14 = vmax.f32 %v1015_v13, 0.0 }
 0x307   :  { %1120 = vmatprep.mubr.f32.mxu0 %v1018_v14 }
 0x308   :  { %1121 = vmatmul.mubr.f32.vlgmr.msra.gmra.mrb[18].mxu0 %v1017_v15 }
 0x3db   :  { %v1257_v16 = vpop.f32.mrb[18].mxu0 }
 0x3dc   :  { %v1258_v17 = vpop.f32.mrb[19].mxu0 }
 0x3dd   :  { %v1259_v62 = vadd.f32 %v1258_v17, %v1257_v16 }
 0x3df   :  { %v1123_v19 = vadd.f32 %v1259_v62, %v1206_v18 }
 0x3e1   :  { %v1126_v60 = vsel %vm171_vm1, %v1123_v19, -inf }
 0x3e2   :  { %1127 = vmax.xlane.f32.xlu0 %v1126_v60 }
 0x46f   :  { %v1128_v0 = vpop.xlane.xlu0 %1127 }
 0x470   :  { %v1129_v20 = vsub.f32 %v1123_v19, %v1128_v0 }
 0x472   :  { %v1130_v21 = vmul.f32 1.442695, %v1129_v20 }
 0x474   :  { %1519 = vpow2.f32 %v1130_v21 }
 0x47e   :  { %v1520_v22 = vpop.eup %1519 }
 0x47f   :  { %v1132_v24 = vsel %vm171_vm1, %v1520_v22, 0.0 }
 0x480   :  { %1133 = vadd.xlane.f32.xlu0 %v1132_v24 }
 0x481   :  { %1578 = shalt.err (!%p1575_p6)
}
 0x482   :  { %s1579_s25 = scalar_lea.hbm %s1939_s10, 32 }
 0x483   :  { %p1580_p7 = scmp.ne.s32.totalorder %s1939_s10, %s1579_s25  ;;  %p1583_p8 = scmp.lt.u32.totalorder %s1579_s25, %s1939_s10 }
 0x485   :  { %p1585_p9 = pnand %p1583_p8, %p1580_p7 }
 0x487   :  { %1588 = shalt.err (!%p1585_p9)
}
 0x488   :  { %1157 = dma.vmem_to_hbm [thread:$0]  %s1155_s23, 32, %s1939_s10, [#allocation10]  }
 0x489   :  { %s1628_s30 = smov [#allocation8]  }
 0x48a   :  { %s1144_s0 = sshll.u32 %s1628_s30, 4  ;;  %s1145_s0 = int_to_ptr.vmem [resolvable:$true] %s1144_s0 }
 0x48b   :  { %s1589_s11 = scalar_lea.vmem %s1145_s0, 32  ;;  %p1594_p11 = scmp.lt.s32.totalorder %s1145_s0, %s1145_s0 }
 0x48c   :  { %p1590_p10 = scmp.ne.s32.totalorder %s1145_s0, %s1589_s11  ;;  %p1595_p12 = scmp.lt.s32.totalorder %s1589_s11, %s1589_s11 }
 0x48e   :  { %p1596_p13 = por %p1595_p12, %p1594_p11 }
 0x490   :  { %p1597_p0 = pnand %p1596_p13, %p1590_p10 }
 0x50d   :  { %v1134_v25 = vpop.xlane.xlu0 %1133 }
 0x50e   :  { %1521 = vrcp.f32 %v1134_v25 }
 0x518   :  { %v1522_v26 = vpop.eup %1521 }
 0x519   :  { %v1136_v27 = vmul.f32 %v1522_v26, %v1520_v22 }
 0x51b   :  { %1137 = vst [vmem:[#allocation8] sm:$0x3] %v1136_v27 }
 0x51c   :  { %1600 = shalt.err (!%p1597_p0)
}
 0x51d   :  { %s1601_s13 = scalar_lea.hbm %s1938_s9, 32 }
 0x51e   :  { %p1602_p1 = scmp.ne.s32.totalorder %s1938_s9, %s1601_s13  ;;  %p1605_p2 = scmp.lt.u32.totalorder %s1601_s13, %s1938_s9 }
 0x520   :  { %p1607_p3 = pnand %p1605_p2, %p1602_p1 }
 0x522   :  { %1610 = shalt.err (!%p1607_p3)
}
 0x523   :  { %1147 = dma.vmem_to_hbm [thread:$0]  %s1145_s0, 32, %s1938_s9, [#allocation5]  }
 0x524   :  { %1615 = dma.done.wait [#allocation5], 32  }
 0x525   :  { %1616 = vsyncadd [#allocation5], 4294967264 }
 0x526   :  { %1617 = dma.done.wait [#allocation10], 32  }
 0x527   :  { %1618 = vsyncadd [#allocation10], 4294967264 }
 0x528   :  { %1164 = vsyncpa [#allocation4], 1 }
 0x529   :  { %1165 = vsyncpa [#allocation7], 1 }
 0x52a   :  { %1166 = vsyncpa [#allocation5], 1 }
 0x52b   :  { %1167 = vsyncpa [#allocation10], 1 }

</bundles_post_ra>
